<compile_context>
chip_gen: v5e
topology: v5e:2x2
jax: 0.10.0
libtpu: 0.0.40
codegen_flags: <defaults>
</compile_context>

<pallas_src>
import functools

import jax
import jax.numpy as jnp
from jax.experimental import pallas as pl
from jax.experimental.pallas import tpu as pltpu


# ---------------------------------------------------------------------------
# helpers
# ---------------------------------------------------------------------------
def _round_up(v, m):
    return (v + m - 1) // m * m


def _cdiv(a, b):
    return (a + b - 1) // b


def _sublane(dtype):
    # Sub-32-bit dtypes pack along sublanes: 8 rows/vreg for 32-bit,
    # 16 for 16-bit, 32 for 8-bit.
    itemsize = jnp.dtype(dtype).itemsize
    return 8 * max(1, 4 // itemsize)


def _balanced_tile(dim, tile_max, align):
    """Largest aligned tile <= tile_max such that padding waste < one tile."""
    dim = max(int(dim), 1)
    tile_max = max(align, _round_up(min(tile_max, _round_up(dim, align)), align))
    n_tiles = _cdiv(dim, tile_max)
    return _round_up(_cdiv(dim, n_tiles), align)


def _vmem_cap_bytes():
    """Physical VMEM of this chip (128 MiB v5e/v6e, 64 MiB per-TC v7x)."""
    try:
        return int(pltpu.get_tpu_info().vmem_capacity_bytes)
    except Exception:
        return 64 * 1024 * 1024  # conservative (v7x) fallback


# ---------------------------------------------------------------------------
# kernel
# ---------------------------------------------------------------------------
def _linear_kernel(x_ref, w_ref, b_ref, o_ref, acc_ref):
    # x_ref: (tm, tk), w_ref: (tk, tn), b_ref: (1, tn), o_ref: (tm, tn)
    k = pl.program_id(2)

    @pl.when(k == 0)
    def _():
        # Fold the bias into the accumulator init: saves a full-tile zero store
        # and a full-tile VALU add in the epilogue.
        acc_ref[...] = jnp.broadcast_to(
            b_ref[...].astype(jnp.float32), acc_ref.shape
        )

    # Canonical contraction: (tm, tk) x (tk, tn) -> (tm, tn) on the MXU,
    # accumulated in f32.
    acc_ref[...] += jnp.dot(
        x_ref[...], w_ref[...], preferred_element_type=jnp.float32
    )

    @pl.when(k == pl.num_programs(2) - 1)
    def _():
        o_ref[...] = acc_ref[...].astype(o_ref.dtype)


# ---------------------------------------------------------------------------
# pallas_call wrapper
# ---------------------------------------------------------------------------
@functools.partial(jax.jit, static_argnames=("tm", "tn", "tk"))
def _linear_pallas(x_p, w_t, b2, *, tm, tn, tk):
    """x_p: (Np, Kp) zero-padded, w_t: (Kp, Mp) transposed+padded, b2: (1, Mp)."""
    Np, Kp = x_p.shape
    Kp2, Mp = w_t.shape
    assert Kp == Kp2
    grid = (Np // tm, Mp // tn, Kp // tk)
    grid_i, grid_j, grid_k = grid

    in_bytes = x_p.dtype.itemsize
    # double-buffered x/w tiles + bias + double-buffered output + f32 accumulator
    vmem_est = (
        2 * (tm * tk + tk * tn) * in_bytes
        + 2 * tn * b2.dtype.itemsize
        + 2 * tm * tn * x_p.dtype.itemsize
        + tm * tn * 4
    )
    cap = _vmem_cap_bytes()
    vmem_limit = int(
        min(max(int(vmem_est * 1.5), 32 * 1024 * 1024), int(cap * 0.875))
    )

    return pl.pallas_call(
        _linear_kernel,
        out_shape=jax.ShapeDtypeStruct((Np, Mp), x_p.dtype),
        grid_spec=pltpu.PrefetchScalarGridSpec(
            num_scalar_prefetch=0,
            grid=grid,
            in_specs=[
                pl.BlockSpec((tm, tk), lambda i, j, k: (i, k)),  # x tile
                pl.BlockSpec((tk, tn), lambda i, j, k: (k, j)),  # weight.T tile
                pl.BlockSpec((1, tn), lambda i, j, k: (0, j)),   # bias tile
            ],
            out_specs=pl.BlockSpec((tm, tn), lambda i, j, k: (i, j)),
            scratch_shapes=[pltpu.VMEM((tm, tn), jnp.float32)],
        ),
        compiler_params=pltpu.CompilerParams(
            dimension_semantics=("parallel", "parallel", "arbitrary"),
            vmem_limit_bytes=vmem_limit,
        ),
        cost_estimate=pl.CostEstimate(
            flops=2 * Np * Mp * Kp,
            # actual HBM traffic including re-read factors from the tiling
            bytes_accessed=int(
                Np * Kp * in_bytes * grid_j          # x re-read per j block
                + Kp * Mp * in_bytes * grid_i        # weight re-read per i block
                + Np * Mp * x_p.dtype.itemsize       # output written once
                + Mp * b2.dtype.itemsize * grid_i    # bias
            ),
            transcendentals=0,
        ),
    )(x_p, w_t, b2)


# ---------------------------------------------------------------------------
# user-facing API
# ---------------------------------------------------------------------------
def prepare_linear_params(weight, bias, *, tn_max=512, tk_max=2048):
    """One-time HBM prep: transpose weight (out, in) -> (in, out) and zero-pad
    both operands to tile multiples.  Call once at init; reuse across steps."""
    M, K = weight.shape
    assert bias.shape == (M,)
    tn = _balanced_tile(M, tn_max, 128)
    tk = _balanced_tile(K, tk_max, 128)
    Mp, Kp = _round_up(M, tn), _round_up(K, tk)
    w_t = jnp.pad(weight.T, ((0, Kp - K), (0, Mp - M)))  # (Kp, Mp)
    b2 = jnp.pad(bias, (0, Mp - M)).reshape(1, Mp)       # (1, Mp)
    meta = dict(M=M, K=K, tn=tn, tk=tk)
    return w_t, b2, meta


def linear_apply(x, w_t, b2, meta, *, tm_max=512):
    """y = x @ weight.T + bias using pre-prepared (transposed, padded) weights."""
    N, K = x.shape
    assert K == meta["K"], "in_features mismatch"
    M, tn, tk = meta["M"], meta["tn"], meta["tk"]
    Kp, Mp = w_t.shape

    sub = _sublane(x.dtype)                 # dtype-aware sublane alignment
    tm = _balanced_tile(N, tm_max, sub)
    Np = _round_up(N, tm)

    # Skinny batch: if the batch axis is a single block, split the out-feature
    # axis into >= 2 blocks so both v7x TensorCores (sharded over the parallel
    # grid axes) get work.  x is tiny here, so its extra re-read is negligible.
    if Np // tm == 1 and Mp // tn == 1 and tn >= 256 and tn % 256 == 0:
        tn = tn // 2

    # Only x is padded per call (cheap); the weight was padded once in prepare.
    x_p = x if (Np == N and Kp == K) else jnp.pad(x, ((0, Np - N), (0, Kp - K)))

    out = _linear_pallas(x_p, w_t, b2, tm=tm, tn=tn, tk=tk)
    if Np != N or Mp != M:
        out = out[:N, :M]
    return out


def linear_forward(x, weight, bias, *, tm_max=512, tn_max=512, tk_max=2048):
    """Convenience wrapper (torch.nn.Linear semantics).  Re-prepares the weight
    every call; for repeated use call prepare_linear_params once instead."""
    w_t, b2, meta = prepare_linear_params(weight, bias, tn_max=tn_max, tk_max=tk_max)
    return linear_apply(x, w_t, b2, meta, tm_max=tm_max)


def init_linear_params(key, in_features, out_features, dtype=jnp.float32):
    # Mimics the module __init__: kaiming-uniform-style weight,
    # uniform(-1/sqrt(in), 1/sqrt(in)) bias.
    kw, kb = jax.random.split(key)
    w_bound = (6.0 / in_features) ** 0.5
    b_bound = 1.0 / (in_features ** 0.5) if in_features > 0 else 0.0
    weight = jax.random.uniform(
        kw, (out_features, in_features), dtype=dtype, minval=-w_bound, maxval=w_bound
    )
    bias = jax.random.uniform(
        kb, (out_features,), dtype=dtype, minval=-b_bound, maxval=b_bound
    )
    return weight, bias


if __name__ == "__main__":
    key = jax.random.PRNGKey(0)

    # --- small shapes matching the module's forward contract ------------------
    k_x, k_p = jax.random.split(key)
    N, in_features, out_features = 8, 32, 64
    x = jax.random.normal(k_x, (N, in_features), dtype=jnp.float32)
    weight, bias = init_linear_params(k_p, in_features, out_features)

    w_t, b2, meta = prepare_linear_params(weight, bias)   # one-time weight prep
    y = jax.block_until_ready(linear_apply(x, w_t, b2, meta))
    y_ref = x @ weight.T + bias
    assert y.shape == (N, out_features)
    assert jnp.allclose(y, y_ref, atol=1e-4, rtol=1e-4)

    # --- second check: non-aligned dims, multi-block grid, skinny-batch split -
    k_x2, k_p2 = jax.random.split(jax.random.PRNGKey(1))
    N2, K2, M2 = 300, 700, 512
    x2 = jax.random.normal(k_x2, (N2, K2), dtype=jnp.float32)
    weight2, bias2 = init_linear_params(k_p2, K2, M2)
    y2 = jax.block_until_ready(linear_forward(x2, weight2, bias2))
    y2_ref = x2 @ weight2.T + bias2
    assert y2.shape == (N2, M2)
    assert jnp.allclose(y2, y2_ref, atol=1e-3, rtol=1e-4)

    print("KERNEL_OK")
</pallas_src>

<mosaic_0001>
module attributes {stable_mosaic.version = 11 : i64} {
  func.func @_linear_kernel(%arg0: i32, %arg1: i32, %arg2: i32, %arg3: memref<8x128xf32, #tpu.memory_space<vmem>>, %arg4: memref<128x128xf32, #tpu.memory_space<vmem>>, %arg5: memref<1x128xf32, #tpu.memory_space<vmem>>, %arg6: memref<8x128xf32, #tpu.memory_space<vmem>>, %arg7: memref<8x128xf32, #tpu.memory_space<vmem>>) attributes {dimension_semantics = [#tpu.dimension_semantics<parallel>, #tpu.dimension_semantics<parallel>, #tpu.dimension_semantics<arbitrary>], iteration_bounds = array<i64: 1, 1, 1>, scalar_prefetch = 0 : i64, scratch_operands = 1 : i64, tpu.core_type = #tpu.core_type<tc>, window_params = [{transform_indices = @transform_0, window_bounds = array<i64: 8, 128>}, {transform_indices = @transform_1, window_bounds = array<i64: 128, 128>}, {transform_indices = @transform_2, window_bounds = array<i64: 1, 128>}, {transform_indices = @transform_3, window_bounds = array<i64: 8, 128>}]} {
    %c0_i32 = arith.constant 0 : i32
    %0 = arith.cmpi eq, %arg2, %c0_i32 : i32
    %1 = arith.extui %0 : i1 to i32
    %c0_i32_0 = arith.constant 0 : i32
    %2 = arith.cmpi ne, %1, %c0_i32_0 : i32
    scf.if %2 {
      %c0_10 = arith.constant 0 : index
      %c0_11 = arith.constant 0 : index
      %12 = vector.load %arg5[%c0_10, %c0_11] : memref<1x128xf32, #tpu.memory_space<vmem>>, vector<1x128xf32>
      %13 = vector.shape_cast %12 : vector<1x128xf32> to vector<1x128xf32>
      %14 = vector.broadcast %13 : vector<1x128xf32> to vector<8x128xf32>
      %c0_12 = arith.constant 0 : index
      %c0_13 = arith.constant 0 : index
      %15 = vector.load %arg7[%c0_12, %c0_13] : memref<8x128xf32, #tpu.memory_space<vmem>>, vector<8x128xf32>
      tpu.vector_store %arg7[%c0_12, %c0_13], %14 {strides = array<i32>} : memref<8x128xf32, #tpu.memory_space<vmem>>, vector<8x128xf32>,
    } else {
    }
    %c0 = arith.constant 0 : index
    %c0_1 = arith.constant 0 : index
    %3 = vector.load %arg7[%c0, %c0_1] : memref<8x128xf32, #tpu.memory_space<vmem>>, vector<8x128xf32>
    %c0_2 = arith.constant 0 : index
    %c0_3 = arith.constant 0 : index
    %4 = vector.load %arg3[%c0_2, %c0_3] : memref<8x128xf32, #tpu.memory_space<vmem>>, vector<8x128xf32>
    %c0_4 = arith.constant 0 : index
    %c0_5 = arith.constant 0 : index
    %5 = vector.load %arg4[%c0_4, %c0_5] : memref<128x128xf32, #tpu.memory_space<vmem>>, vector<128x128xf32>
    %cst = arith.constant dense<0.000000e+00> : vector<8x128xf32>
    %6 = tpu.matmul %4, %5, %cst {dimension_numbers = #tpu.dot_dimension_numbers<[1], [0], [0], [1], [0, 0, 1, 1], [], []>} : vector<8x128xf32>, vector<128x128xf32>, vector<8x128xf32> -> vector<8x128xf32>
    %7 = arith.addf %3, %6 : vector<8x128xf32>
    %c0_6 = arith.constant 0 : index
    %c0_7 = arith.constant 0 : index
    %8 = vector.load %arg7[%c0_6, %c0_7] : memref<8x128xf32, #tpu.memory_space<vmem>>, vector<8x128xf32>
    tpu.vector_store %arg7[%c0_6, %c0_7], %7 {strides = array<i32>} : memref<8x128xf32, #tpu.memory_space<vmem>>, vector<8x128xf32>,
    %c0_i32_8 = arith.constant 0 : i32
    %9 = arith.cmpi eq, %arg2, %c0_i32_8 : i32
    %10 = arith.extui %9 : i1 to i32
    %c0_i32_9 = arith.constant 0 : i32
    %11 = arith.cmpi ne, %10, %c0_i32_9 : i32
    scf.if %11 {
      %c0_10 = arith.constant 0 : index
      %c0_11 = arith.constant 0 : index
      %12 = vector.load %arg7[%c0_10, %c0_11] : memref<8x128xf32, #tpu.memory_space<vmem>>, vector<8x128xf32>
      %c0_12 = arith.constant 0 : index
      %c0_13 = arith.constant 0 : index
      %13 = vector.load %arg6[%c0_12, %c0_13] : memref<8x128xf32, #tpu.memory_space<vmem>>, vector<8x128xf32>
      tpu.vector_store %arg6[%c0_12, %c0_13], %12 {strides = array<i32>} : memref<8x128xf32, #tpu.memory_space<vmem>>, vector<8x128xf32>,
    } else {
    }
    return
  }
  func.func @transform_0(%arg0: i32, %arg1: i32, %arg2: i32) -> (i32, i32) {
    %c0_i32 = arith.constant 0 : i32
    return %arg0, %arg2 : i32, i32
  }
  func.func @transform_1(%arg0: i32, %arg1: i32, %arg2: i32) -> (i32, i32) {
    %c0_i32 = arith.constant 0 : i32
    return %arg2, %arg1 : i32, i32
  }
  func.func @transform_2(%arg0: i32, %arg1: i32, %arg2: i32) -> (i32, i32) {
    %c0_i32 = arith.constant 0 : i32
    %c0_i32_0 = arith.constant 0 : i32
    return %c0_i32, %arg1 : i32, i32
  }
  func.func @transform_3(%arg0: i32, %arg1: i32, %arg2: i32) -> (i32, i32) {
    %c0_i32 = arith.constant 0 : i32
    return %arg0, %arg1 : i32, i32
  }
}

</mosaic_0001>

<bundles_post_ra>
// kernel: _linear_pallas.1
= control target key start
LH: loop header
LB: loop body
LE: loop exit
PB: predicated region body
PF: predicated region fallthrough
CT: control target
= control target key end

     0   :  { %8 = vsyncpa [#allocation4], 0  ;;  %s238_s0 = inlined_call_operand.hbm [shape: f32[8,128], index: 0, kind: input, shape index: {}]   ;;  %s239_s1 = inlined_call_operand.hbm [shape: f32[128,128], index: 1, kind: input, shape index: {}]   ;;  %s240_s2 = inlined_call_operand.vmem [shape: f32[1,128], index: 2, kind: input, shape index: {}]   ;;  %s241_s3 = inlined_call_operand.hbm [shape: f32[8,128], index: 3, kind: output, shape index: {}]  }
   0x1   :  { %9 = vsyncpa [#allocation7], 0 }
   0x2   :  { %10 = vsyncpa [#allocation5], 0  ;;  %s16_s14 = sshll.u32 %s238_s0, 4  ;;  %s201_s15 = smov [#allocation3]   ;;  %s17_s14 = int_to_ptr.hbm [resolvable:$true] %s16_s14 }
   0x3   :  { %s18_s16 = sshll.u32 %s201_s15, 4  ;;  %s26_s19 = sshll.u32 %s239_s1, 4  ;;  %s19_s16 = int_to_ptr.vmem [resolvable:$true] %s18_s16  ;;  %s27_s19 = int_to_ptr.hbm [resolvable:$true] %s26_s19 }
   0x4   :  { %21 = dma.hbm_to_vmem [thread:$0]  %s17_s14, 128, %s19_s16, [#allocation4]  }
   0x5   :  { %s202_s20 = smov [#allocation6]   ;;  %s203_s22 = smov 128  }
   0x6   :  { %s28_s21 = sshll.u32 %s202_s20, 4  ;;  %s204_s23 = smov 8   ;;  %s29_s21 = int_to_ptr.vmem [resolvable:$true] %s28_s21 }
   0x7   :  { %34 = dma.hbm_to_vmem [thread:$0]  %s27_s19, 2048, %s29_s21, [#allocation7], %s203_s22, %s203_s22, %s204_s23  }
   0x8   :  { %195 = dma.done.wait [#allocation4], 128  }
   0x9   :  { %196 = vsyncadd [#allocation4], 4294967168 }
   0xa   :  { %197 = dma.done.wait [#allocation7], 2048  }
   0xb   :  { %198 = vsyncadd [#allocation7], 4294965248  ;;  %v71_v0 = vld [vmem:[#allocation6 + $0x78] sm:$0xff]  ;;  %v70_v1 = vld [vmem:[#allocation6 + $0x70] sm:$0xff]  ;;  %s205_s24 = smov [#allocation8]   ;;  %s106_s28 = sshll.u32 %s241_s3, 4  ;;  %s107_s28 = int_to_ptr.hbm [resolvable:$true] %s106_s28 }
   0xc   :  { %72 = vmatpush.msra.mxu0 %v71_v0  ;;  %v69_v2 = vld [vmem:[#allocation6 + $0x68] sm:$0xff]  ;;  %v68_v3 = vld [vmem:[#allocation6 + $0x60] sm:$0xff]  ;;  %v67_v4 = vld [vmem:[#allocation6 + $0x58] sm:$0xff]  ;;  %s104_s25 = sshll.u32 %s205_s24, 4  ;;  %s105_s25 = int_to_ptr.vmem [resolvable:$true] %s104_s25 }
   0xd   :  { %v66_v5 = vld [vmem:[#allocation6 + $0x50] sm:$0xff]  ;;  %v65_v6 = vld [vmem:[#allocation6 + $0x48] sm:$0xff]  ;;  %v64_v7 = vld [vmem:[#allocation6 + $0x40] sm:$0xff] }
   0xe   :  { %73 = vmatpush.msra.mxu0 %v70_v1  ;;  %v63_v8 = vld [vmem:[#allocation6 + $0x38] sm:$0xff]  ;;  %v62_v9 = vld [vmem:[#allocation6 + $0x30] sm:$0xff]  ;;  %v61_v10 = vld [vmem:[#allocation6 + $0x28] sm:$0xff] }
   0xf   :  { %v60_v11 = vld [vmem:[#allocation6 + $0x20] sm:$0xff]  ;;  %v59_v12 = vld [vmem:[#allocation6 + $0x18] sm:$0xff]  ;;  %v58_v13 = vld [vmem:[#allocation6 + $0x10] sm:$0xff] }
  0x10   :  { %74 = vmatpush.msra.mxu0 %v69_v2  ;;  %v57_v14 = vld [vmem:[#allocation6 + $0x8] sm:$0xff]  ;;  %v56_v15 = vld [vmem:[#allocation6] sm:$0xff]  ;;  %v55_v16 = vld [vmem:[#allocation3] sm:$0xff] }
  0x11   :  { %v122_v17 = vld [vmem:[%s240_s2] ss:$0 sm:$0xff] }
  0x12   :  { %75 = vmatpush.msra.mxu0 %v68_v3 }
  0x14   :  { %76 = vmatpush.msra.mxu0 %v67_v4 }
  0x16   :  { %77 = vmatpush.msra.mxu0 %v66_v5 }
  0x18   :  { %78 = vmatpush.msra.mxu0 %v65_v6 }
  0x1a   :  { %79 = vmatpush.msra.mxu0 %v64_v7 }
  0x1c   :  { %80 = vmatpush.msra.mxu0 %v63_v8 }
  0x1e   :  { %81 = vmatpush.msra.mxu0 %v62_v9 }
  0x20   :  { %82 = vmatpush.msra.mxu0 %v61_v10 }
  0x22   :  { %83 = vmatpush.msra.mxu0 %v60_v11 }
  0x24   :  { %84 = vmatpush.msra.mxu0 %v59_v12 }
  0x26   :  { %85 = vmatpush.msra.mxu0 %v58_v13 }
  0x28   :  { %86 = vmatpush.msra.mxu0 %v57_v14 }
  0x2a   :  { %87 = vmatpush.msra.mxu0 %v56_v15 }
  0x2b   :  { %88 = vmatmul.f32.vlgmr.msra.gmra.mxu0 %v55_v16 }
  0xa8   :  { %v89_v18 = vpop.f32.mrf.mxu0 }
  0xa9   :  { %v92_v19 = vadd.f32 %v122_v17, %v89_v18 }
  0xab   :  { %98 = vst [vmem:[#allocation8] sm:$0xff] %v92_v19 }
  0xac   :  { %109 = dma.vmem_to_hbm [thread:$0]  %s105_s25, 128, %s107_s28, [#allocation5]  }
  0xad   :  { %199 = dma.done.wait [#allocation5], 128  }
  0xae   :  { %200 = vsyncadd [#allocation5], 4294967168 }
  0xaf   :  { %114 = vsyncpa [#allocation4], 1 }
  0xb0   :  { %115 = vsyncpa [#allocation7], 1 }
  0xb1   :  { %116 = vsyncpa [#allocation5], 1 }

</bundles_post_ra>
